<compile_context>
chip_gen: v6e
topology: v6e:2x2x1
jax: 0.10.0
libtpu: 0.0.40
codegen_flags: <defaults>
</compile_context>

<pallas_src>
import functools

import jax
import jax.numpy as jnp
from jax.experimental import pallas as pl
from jax.experimental.pallas import tpu as pltpu


def _round_up(x: int, m: int) -> int:
    return ((x + m - 1) // m) * m


def _mlp_kernel(x_ref, w1_ref, b1_ref, w2_ref, b2_ref, o_ref):
    # x_ref : (TM, C_in_p)    w1_ref: (C_in_p, C_mid_p)   b1_ref: (1, C_mid_p)
    # w2_ref: (C_mid_p, C_out_p)  b2_ref: (1, C_out_p)    o_ref : (TM, C_out_p)
    x = x_ref[...]
    h = jnp.dot(x, w1_ref[...], preferred_element_type=jnp.float32) + b1_ref[...]
    h = jnp.maximum(h, 0.0)  # ReLU
    y = jnp.dot(h, w2_ref[...], preferred_element_type=jnp.float32) + b2_ref[...]
    o_ref[...] = y.astype(o_ref.dtype)


@functools.partial(jax.jit, static_argnames=("tm",))
def conv_relu_conv(x_nchw, w1, b1, w2, b2, *, tm=1024):
    """Fused Conv2d(1x1)->ReLU->Conv2d(1x1) on NCHW input.

    x_nchw: (N, C_in, H, W); w1: (C_mid, C_in, 1, 1); w2: (C_out, C_mid, 1, 1).
    """
    N, C_in, H, W = x_nchw.shape
    C_mid = w1.shape[0]
    C_out = w2.shape[0]
    M = N * H * W

    # --- pad channels to lane multiples (128) and pixels to the tile size ---
    C_in_p = _round_up(C_in, 128)
    C_mid_p = _round_up(C_mid, 128)
    C_out_p = _round_up(C_out, 128)

    TM = min(tm, _round_up(M, 8))          # second-to-last dim multiple of 8
    M_pad = _round_up(M, TM)
    grid = (M_pad // TM,)

    # NCHW -> (M, C_in) channels-last flatten, zero-padded.
    # TODO(synk): callers that already hold NHWC data could skip this transpose
    # (it is pure layout plumbing to match the PyTorch NCHW module interface).
    x_flat = jnp.transpose(x_nchw, (0, 2, 3, 1)).reshape(M, C_in)
    x_pad = jnp.zeros((M_pad, C_in_p), x_flat.dtype).at[:M, :C_in].set(x_flat)

    # Conv weights (C_out, C_in, 1, 1) -> zero-padded matmul weights.
    # Zero padding keeps the math exact: padded mid channels produce
    # relu(0) = 0 and hit zero rows of w2; padded out channels are sliced off.
    w1_mat = (
        jnp.zeros((C_in_p, C_mid_p), jnp.float32)
        .at[:C_in, :C_mid]
        .set(jnp.transpose(w1.reshape(C_mid, C_in), (1, 0)))
    )
    w2_mat = (
        jnp.zeros((C_mid_p, C_out_p), jnp.float32)
        .at[:C_mid, :C_out]
        .set(jnp.transpose(w2.reshape(C_out, C_mid), (1, 0)))
    )
    b1_row = jnp.zeros((1, C_mid_p), jnp.float32).at[0, :C_mid].set(b1)
    b2_row = jnp.zeros((1, C_out_p), jnp.float32).at[0, :C_out].set(b2)

    out_flat = pl.pallas_call(
        _mlp_kernel,
        out_shape=jax.ShapeDtypeStruct((M_pad, C_out_p), x_nchw.dtype),
        grid=grid,
        in_specs=[
            pl.BlockSpec((TM, C_in_p), lambda i: (i, 0)),      # x tile, streams
            pl.BlockSpec((C_in_p, C_mid_p), lambda i: (0, 0)),  # w1, resident
            pl.BlockSpec((1, C_mid_p), lambda i: (0, 0)),       # b1, resident
            pl.BlockSpec((C_mid_p, C_out_p), lambda i: (0, 0)), # w2, resident
            pl.BlockSpec((1, C_out_p), lambda i: (0, 0)),       # b2, resident
        ],
        out_specs=pl.BlockSpec((TM, C_out_p), lambda i: (i, 0)),
        compiler_params=pltpu.CompilerParams(
            dimension_semantics=("parallel",),
        ),
    )(x_pad, w1_mat, b1_row, w2_mat, b2_row)

    # Slice padding away, (M, C_out) -> NCHW.
    out = out_flat[:M, :C_out]
    return jnp.transpose(out.reshape(N, H, W, C_out), (0, 3, 1, 2))


def init_params(key):
    """Deterministic parameter init mirroring PyTorch Conv2d default (uniform)."""
    k1, k2, k3, k4 = jax.random.split(key, 4)
    c_in, c_mid, c_out = 440, 110, 440
    # PyTorch: U(-sqrt(k), sqrt(k)) with k = 1 / (fan_in * kh * kw)
    bound1 = 1.0 / (c_in ** 0.5)
    bound2 = 1.0 / (c_mid ** 0.5)
    w1 = jax.random.uniform(k1, (c_mid, c_in, 1, 1), jnp.float32, -bound1, bound1)
    b1 = jax.random.uniform(k2, (c_mid,), jnp.float32, -bound1, bound1)
    w2 = jax.random.uniform(k3, (c_out, c_mid, 1, 1), jnp.float32, -bound2, bound2)
    b2 = jax.random.uniform(k4, (c_out,), jnp.float32, -bound2, bound2)
    return w1, b1, w2, b2


def ref_forward(x, w1, b1, w2, b2):
    """Plain-JAX reference (1x1 convs == channel matmuls)."""
    N, C_in, H, W = x.shape
    C_mid = w1.shape[0]
    C_out = w2.shape[0]
    xf = jnp.transpose(x, (0, 2, 3, 1)).reshape(-1, C_in)
    h = jnp.maximum(xf @ w1.reshape(C_mid, C_in).T + b1, 0.0)
    y = h @ w2.reshape(C_out, C_mid).T + b2
    return jnp.transpose(y.reshape(N, H, W, C_out), (0, 3, 1, 2))


if __name__ == "__main__":
    key = jax.random.PRNGKey(0)
    kx1, kx2, kp = jax.random.split(key, 3)
    w1, b1, w2, b2 = init_params(kp)

    # 1) A small batched spatial shape that actually exercises the M-grid
    #    (M = 2*16*16 = 512 rows -> 4 grid steps at tm=128).
    x_big = jax.random.normal(kx1, (2, 440, 16, 16), jnp.float32)
    out_big = jax.block_until_ready(conv_relu_conv(x_big, w1, b1, w2, b2, tm=128))
    ref_big = ref_forward(x_big, w1, b1, w2, b2)
    assert out_big.shape == (2, 440, 16, 16)
    assert jnp.allclose(out_big, ref_big, atol=1e-4, rtol=1e-4)

    # 2) The exact shape from the PyTorch module: (1, 440, 1, 1) (M = 1).
    #    Pallas is pure overhead at this size, but must still be correct.
    x_mod = jax.random.normal(kx2, (1, 440, 1, 1), jnp.float32)
    out_mod = jax.block_until_ready(conv_relu_conv(x_mod, w1, b1, w2, b2))
    ref_mod = ref_forward(x_mod, w1, b1, w2, b2)
    assert out_mod.shape == (1, 440, 1, 1)
    assert jnp.allclose(out_mod, ref_mod, atol=1e-4, rtol=1e-4)

    print("KERNEL_OK")
</pallas_src>

<mosaic_0001>
module attributes {stable_mosaic.version = 11 : i64} {
  func.func @_mlp_kernel(%arg0: i32, %arg1: memref<128x512xf32, #tpu.memory_space<vmem>>, %arg2: memref<512x128xf32, #tpu.memory_space<vmem>>, %arg3: memref<1x128xf32, #tpu.memory_space<vmem>>, %arg4: memref<128x512xf32, #tpu.memory_space<vmem>>, %arg5: memref<1x512xf32, #tpu.memory_space<vmem>>, %arg6: memref<128x512xf32, #tpu.memory_space<vmem>>) attributes {dimension_semantics = [#tpu.dimension_semantics<parallel>], iteration_bounds = array<i64: 4>, scalar_prefetch = 0 : i64, scratch_operands = 0 : i64, tpu.core_type = #tpu.core_type<tc>, window_params = [{transform_indices = @transform_0, window_bounds = array<i64: 128, 512>}, {pipeline_mode = #tpu.pipeline_mode<synchronous>, transform_indices = @transform_1, window_bounds = array<i64: 512, 128>}, {pipeline_mode = #tpu.pipeline_mode<synchronous>, transform_indices = @transform_2, window_bounds = array<i64: 1, 128>}, {pipeline_mode = #tpu.pipeline_mode<synchronous>, transform_indices = @transform_3, window_bounds = array<i64: 128, 512>}, {pipeline_mode = #tpu.pipeline_mode<synchronous>, transform_indices = @transform_4, window_bounds = array<i64: 1, 512>}, {transform_indices = @transform_5, window_bounds = array<i64: 128, 512>}]} {
    %c0 = arith.constant 0 : index
    %c0_0 = arith.constant 0 : index
    %0 = vector.load %arg1[%c0, %c0_0] : memref<128x512xf32, #tpu.memory_space<vmem>>, vector<128x512xf32>
    %c0_1 = arith.constant 0 : index
    %c0_2 = arith.constant 0 : index
    %1 = vector.load %arg2[%c0_1, %c0_2] : memref<512x128xf32, #tpu.memory_space<vmem>>, vector<512x128xf32>
    %cst = arith.constant dense<0.000000e+00> : vector<128x128xf32>
    %2 = tpu.matmul %0, %1, %cst {dimension_numbers = #tpu.dot_dimension_numbers<[1], [0], [0], [1], [0, 0, 1, 1], [], []>} : vector<128x512xf32>, vector<512x128xf32>, vector<128x128xf32> -> vector<128x128xf32>
    %c0_3 = arith.constant 0 : index
    %c0_4 = arith.constant 0 : index
    %3 = vector.load %arg3[%c0_3, %c0_4] : memref<1x128xf32, #tpu.memory_space<vmem>>, vector<1x128xf32>
    %4 = vector.broadcast %3 : vector<1x128xf32> to vector<128x128xf32>
    %5 = arith.addf %2, %4 : vector<128x128xf32>
    %cst_5 = arith.constant 0.000000e+00 : f32
    %6 = vector.broadcast %cst_5 : f32 to vector<128x128xf32>
    %7 = arith.maximumf %5, %6 : vector<128x128xf32>
    %c0_6 = arith.constant 0 : index
    %c0_7 = arith.constant 0 : index
    %8 = vector.load %arg4[%c0_6, %c0_7] : memref<128x512xf32, #tpu.memory_space<vmem>>, vector<128x512xf32>
    %cst_8 = arith.constant dense<0.000000e+00> : vector<128x512xf32>
    %9 = tpu.matmul %7, %8, %cst_8 {dimension_numbers = #tpu.dot_dimension_numbers<[1], [0], [0], [1], [0, 0, 1, 1], [], []>} : vector<128x128xf32>, vector<128x512xf32>, vector<128x512xf32> -> vector<128x512xf32>
    %c0_9 = arith.constant 0 : index
    %c0_10 = arith.constant 0 : index
    %10 = vector.load %arg5[%c0_9, %c0_10] : memref<1x512xf32, #tpu.memory_space<vmem>>, vector<1x512xf32>
    %11 = vector.broadcast %10 : vector<1x512xf32> to vector<128x512xf32>
    %12 = arith.addf %9, %11 : vector<128x512xf32>
    %c0_11 = arith.constant 0 : index
    %c0_12 = arith.constant 0 : index
    %13 = vector.load %arg6[%c0_11, %c0_12] : memref<128x512xf32, #tpu.memory_space<vmem>>, vector<128x512xf32>
    tpu.vector_store %arg6[%c0_11, %c0_12], %12 {strides = array<i32>} : memref<128x512xf32, #tpu.memory_space<vmem>>, vector<128x512xf32>,
    return
  }
  func.func @transform_0(%arg0: i32) -> (i32, i32) {
    %c0_i32 = arith.constant 0 : i32
    %c0_i32_0 = arith.constant 0 : i32
    return %arg0, %c0_i32 : i32, i32
  }
  func.func @transform_1(%arg0: i32) -> (i32, i32) {
    %c0_i32 = arith.constant 0 : i32
    %c0_i32_0 = arith.constant 0 : i32
    %c0_i32_1 = arith.constant 0 : i32
    return %c0_i32, %c0_i32_0 : i32, i32
  }
  func.func @transform_2(%arg0: i32) -> (i32, i32) {
    %c0_i32 = arith.constant 0 : i32
    %c0_i32_0 = arith.constant 0 : i32
    %c0_i32_1 = arith.constant 0 : i32
    return %c0_i32, %c0_i32_0 : i32, i32
  }
  func.func @transform_3(%arg0: i32) -> (i32, i32) {
    %c0_i32 = arith.constant 0 : i32
    %c0_i32_0 = arith.constant 0 : i32
    %c0_i32_1 = arith.constant 0 : i32
    return %c0_i32, %c0_i32_0 : i32, i32
  }
  func.func @transform_4(%arg0: i32) -> (i32, i32) {
    %c0_i32 = arith.constant 0 : i32
    %c0_i32_0 = arith.constant 0 : i32
    %c0_i32_1 = arith.constant 0 : i32
    return %c0_i32, %c0_i32_0 : i32, i32
  }
  func.func @transform_5(%arg0: i32) -> (i32, i32) {
    %c0_i32 = arith.constant 0 : i32
    %c0_i32_0 = arith.constant 0 : i32
    return %arg0, %c0_i32 : i32, i32
  }
}

</mosaic_0001>

<bundles_post_ra>
// kernel: conv_relu_conv.1
= control target key start
LH: loop header
LB: loop body
LE: loop exit
PB: predicated region body
PF: predicated region fallthrough
CT: control target
= control target key end

     0   :  { %10 = vsyncpa [#allocation3], 0  ;;  %s2298_s0 = inlined_call_operand.vmem [shape: f32[512,512], index: 0, kind: input, shape index: {}]   ;;  %s2299_s1 = inlined_call_operand.vmem [shape: f32[512,128], index: 1, kind: input, shape index: {}]   ;;  %s2300_s2 = inlined_call_operand.vmem [shape: f32[1,128], index: 2, kind: input, shape index: {}]   ;;  %s2301_s3 = inlined_call_operand.vmem [shape: f32[128,512], index: 3, kind: input, shape index: {}]   ;;  %s2302_s4 = inlined_call_operand.vmem [shape: f32[1,512], index: 4, kind: input, shape index: {}]   ;;  %s2303_s5 = inlined_call_operand.hbm [shape: f32[512,512], index: 5, kind: output, shape index: {}]  }
   0x1   :  { %12 = vsyncpa [#allocation3 + $0x1], 0  ;;  %s1535_s18 = smov 0   ;;  %s1537_s19 = smov 0  }
   0x2   :  { %s1539_s20 = smov 0   ;;  %s1541_s21 = smov 0  }
   0x3 LB: > { %s1556_s22 = sadd.s32 4294967295, %s1499_s21   ;;  %s1219_s23 = sadd.s32 4294967294, %s1499_s21   ;;  %s1499_s21 = sphi %s1541_s21, %s2310_s21   ;;  %s1495_s20 = sphi %s1539_s20, %s2309_s20   ;;  %s1491_s19 = sphi %s1537_s19, %s2308_s19   ;;  %s1487_s18 = sphi %s1535_s18, %s2307_s18  }
   0x4   : > { %s1560_s24 = sadd.s32 1, %s1499_s21   ;;  %s135_s25 = sadd.s32 1, %s1495_s20 }
   0x5   : > { %s132_s26 = ssub.s32 %s1499_s21, %s1560_s24  ;;  %p145_p0 = scmp.ne.s32.totalorder %s1495_s20, %s1491_s19 }
   0x6   : > { %p133_p1 = scmp.eq.s32.totalorder %s132_s26, 0  ;;  %p146_p2 = scmp.eq.s32.totalorder %s1556_s22, 3 }
   0x7   : > { %p151_p3 = scmp.ne.s32.totalorder %s1491_s19, %s1487_s18  ;;  %p152_p4 = scmp.eq.s32.totalorder %s1219_s23, 3 }
   0x8   : > { %s1571_s27 = scalar_select %p133_p1, %s1495_s20, %s135_s25  }
   0x9   : > { %p1573_p5 = por %p146_p2, %p145_p0  ;;  %p1577_p6 = por %p152_p4, %p151_p3 }
   0xa   : > { %p1222_p7 = scmp.ge.s32.totalorder %s1499_s21, 1  ;;  %p192_p8 = scmp.lt.s32.totalorder %s1499_s21, 5 }
   0xc   : > { %p193_p9 = pnand %p1222_p7, %p192_p8 }
   0xd   : > { %s1224_s17 = sshll.u32 (!%p193_p9), %s1556_s22, 4  ;;  %s218_s8 = sand.u32 (!%p193_p9), 1, %s1491_s19  }
   0xe   : > { %196 = sbr.rel (%p193_p9) target bundleno = 528 (0x210), region = 40  ;;  %p1694_p10 = scmp.lt.s32.totalorder (!%p193_p9), %s1224_s17, 63 }
   0xf   : > { %s1223_s10 = sshll.u32 (!%p193_p9), %s218_s8, 9  ;;  %s1236_s11 = sshll.u32 (!%p193_p9), %s1556_s22, 13 }
  0x10   : > { %s2246_s16 = scalar_lea.hbm (!%p193_p9), %s2303_s5, %s1236_s11  ;;  %s2258_s22 = scalar_lea.sflag (!%p193_p9), [#allocation3], %s218_s8 }
  0x11   : > { %s1502_s30 = smov (!%p193_p9), [#allocation2]  }
  0x12   : > { %s1443_s6 = sshll.u32 (!%p193_p9), %s1502_s30, 4  ;;  %s1444_s6 = int_to_ptr.vmem [resolvable:$false] %s1443_s6 }
  0x13   : > { %v324_v0 = vld [vmem:[%s2299_s1 + $0xf8] sm:$0xff]  ;;  %v323_v4 = vld [vmem:[%s2299_s1 + $0xf0] sm:$0xff]  ;;  %v322_v8 = vld [vmem:[%s2299_s1 + $0xe8] sm:$0xff]  ;;  %s2312_s17 = smov (!%p1694_p10, %s1224_s17), 63  ;;  %s1445_s7 = scalar_lea.vmem %s1444_s6, 16384 }
  0x14   : > { %v356_v1 = vld [vmem:[%s2299_s1 + $0x1f8] sm:$0xff]  ;;  %1237 = vmatprep.subr.mxu0 %v324_v0  ;;  %v355_v5 = vld [vmem:[%s2299_s1 + $0x1f0] sm:$0xff]  ;;  %v354_v9 = vld [vmem:[%s2299_s1 + $0x1e8] sm:$0xff]  ;;  %s1234_s25 = sshll.u32 %s2312_s17, 5  ;;  %s2119_s17 = scalar_lea.vmem [#allocation2], %s1223_s10 }
  0x15   : > { %v308_v2 = vld [vmem:[%s2299_s1 + $0x78] sm:$0xff]  ;;  %1317 = vmatprep.subr.mxu1 %v356_v1  ;;  %v307_v6 = vld [vmem:[%s2299_s1 + $0x70] sm:$0xff]  ;;  %v306_v10 = vld [vmem:[%s2299_s1 + $0x68] sm:$0xff]  ;;  %s1774_s23 = scalar_lea.vmem %s2298_s0, %s1234_s25  ;;  %s1157_s12 = sshll.u32 %s2119_s17, 4  ;;  %s2248_s12 = int_to_ptr.vmem [resolvable:$true] %s1157_s12 }
  0x16   : > { %v340_v3 = vld [vmem:[%s2299_s1 + $0x178] sm:$0xff]  ;;  %1238 = vmatpush3.msra.mxu0 %v308_v2  ;;  %v339_v7 = vld [vmem:[%s2299_s1 + $0x170] sm:$0xff]  ;;  %v338_v11 = vld [vmem:[%s2299_s1 + $0x168] sm:$0xff]  ;;  %s1439_s26 = scalar_lea.vmem %s2248_s12, 8192  ;;  %p1446_p0 = scmp.lt.s32.totalorder %s2248_s12, %s1444_s6 }
  0x17   : > { %1318 = vmatpush3.msra.mxu1 %v340_v3  ;;  %1239 = vmatprep.subr.mxu0 %v323_v4  ;;  %v321_v12 = vld [vmem:[%s2299_s1 + $0xe0] sm:$0xff]  ;;  %v320_v16 = vld [vmem:[%s2299_s1 + $0xd8] sm:$0xff]  ;;  %v319_v20 = vld [vmem:[%s2299_s1 + $0xd0] sm:$0xff]  ;;  %p1440_p11 = scmp.ne.s32.totalorder %s2248_s12, %s1439_s26  ;;  %p1447_p1 = scmp.lt.s32.totalorder %s1445_s7, %s1439_s26 }
  0x18   : > { %1319 = vmatprep.subr.mxu1 %v355_v5  ;;  %1240 = vmatpush3.msra.mxu0 %v307_v6  ;;  %v353_v13 = vld [vmem:[%s2299_s1 + $0x1e0] sm:$0xff]  ;;  %v352_v17 = vld [vmem:[%s2299_s1 + $0x1d8] sm:$0xff]  ;;  %v351_v21 = vld [vmem:[%s2299_s1 + $0x1d0] sm:$0xff] }
  0x19   : > { %1320 = vmatpush3.msra.mxu1 %v339_v7  ;;  %1241 = vmatprep.subr.mxu0 %v322_v8  ;;  %v305_v14 = vld [vmem:[%s2299_s1 + $0x60] sm:$0xff]  ;;  %v304_v18 = vld [vmem:[%s2299_s1 + $0x58] sm:$0xff]  ;;  %v303_v22 = vld [vmem:[%s2299_s1 + $0x50] sm:$0xff]  ;;  %p1441_p12 = pnand %p1440_p11, %p1573_p5  ;;  %p1448_p2 = por %p1447_p1, %p1446_p0 }
  0x1a   : > { %1321 = vmatprep.subr.mxu1 %v354_v9  ;;  %v337_v15 = vld [vmem:[%s2299_s1 + $0x160] sm:$0xff]  ;;  %1242 = vmatpush3.msra.mxu0 %v306_v10  ;;  %v336_v19 = vld [vmem:[%s2299_s1 + $0x158] sm:$0xff]  ;;  %v335_v23 = vld [vmem:[%s2299_s1 + $0x150] sm:$0xff] }
  0x1b   : > { %1322 = vmatpush3.msra.mxu1 %v338_v11  ;;  %1243 = vmatprep.subr.mxu0 %v321_v12  ;;  %v318_v24 = vld [vmem:[%s2299_s1 + $0xc8] sm:$0xff]  ;;  %v317_v28 = vld [vmem:[%s2299_s1 + $0xc0] sm:$0xff]  ;;  %v316_v32 = vld [vmem:[%s2299_s1 + $0xb8] sm:$0xff]  ;;  %p1442_p13 = pneg %p1441_p12 }
  0x1c   : > { %1323 = vmatprep.subr.mxu1 %v353_v13  ;;  %1244 = vmatpush3.msra.mxu0 %v305_v14  ;;  %v350_v25 = vld [vmem:[%s2299_s1 + $0x1c8] sm:$0xff]  ;;  %v349_v29 = vld [vmem:[%s2299_s1 + $0x1c0] sm:$0xff]  ;;  %v348_v33 = vld [vmem:[%s2299_s1 + $0x1b8] sm:$0xff] }
  0x1d   : > { %1324 = vmatpush3.msra.mxu1 %v337_v15  ;;  %1245 = vmatprep.subr.mxu0 %v320_v16  ;;  %v302_v26 = vld [vmem:[%s2299_s1 + $0x48] sm:$0xff]  ;;  %v301_v30 = vld [vmem:[%s2299_s1 + $0x40] sm:$0xff]  ;;  %v300_v34 = vld [vmem:[%s2299_s1 + $0x38] sm:$0xff]  ;;  %p1449_p3 = pnand %p1448_p2, %p1442_p13 }
  0x1e   : > { %1325 = vmatprep.subr.mxu1 %v352_v17  ;;  %1246 = vmatpush3.msra.mxu0 %v304_v18  ;;  %v334_v27 = vld [vmem:[%s2299_s1 + $0x148] sm:$0xff]  ;;  %v333_v31 = vld [vmem:[%s2299_s1 + $0x140] sm:$0xff]  ;;  %v332_v35 = vld [vmem:[%s2299_s1 + $0x138] sm:$0xff] }
  0x1f   : > { %1326 = vmatpush3.msra.mxu1 %v336_v19  ;;  %1247 = vmatprep.subr.mxu0 %v319_v20  ;;  %v315_v36 = vld [vmem:[%s2299_s1 + $0xb0] sm:$0xff]  ;;  %v314_v40 = vld [vmem:[%s2299_s1 + $0xa8] sm:$0xff]  ;;  %v313_v44 = vld [vmem:[%s2299_s1 + $0xa0] sm:$0xff] }
  0x20   : > { %1327 = vmatprep.subr.mxu1 %v351_v21  ;;  %1248 = vmatpush3.msra.mxu0 %v303_v22  ;;  %v347_v37 = vld [vmem:[%s2299_s1 + $0x1b0] sm:$0xff]  ;;  %v346_v41 = vld [vmem:[%s2299_s1 + $0x1a8] sm:$0xff]  ;;  %v345_v45 = vld [vmem:[%s2299_s1 + $0x1a0] sm:$0xff] }
  0x21   : > { %1328 = vmatpush3.msra.mxu1 %v335_v23  ;;  %1249 = vmatprep.subr.mxu0 %v318_v24  ;;  %v299_v38 = vld [vmem:[%s2299_s1 + $0x30] sm:$0xff]  ;;  %v298_v42 = vld [vmem:[%s2299_s1 + $0x28] sm:$0xff]  ;;  %v297_v46 = vld [vmem:[%s2299_s1 + $0x20] sm:$0xff] }
  0x22   : > { %1329 = vmatprep.subr.mxu1 %v350_v25  ;;  %1250 = vmatpush3.msra.mxu0 %v302_v26  ;;  %v331_v39 = vld [vmem:[%s2299_s1 + $0x130] sm:$0xff]  ;;  %v330_v43 = vld [vmem:[%s2299_s1 + $0x128] sm:$0xff]  ;;  %v329_v47 = vld [vmem:[%s2299_s1 + $0x120] sm:$0xff] }
  0x23   : > { %1330 = vmatpush3.msra.mxu1 %v334_v27  ;;  %1251 = vmatprep.subr.mxu0 %v317_v28  ;;  %v312_v48 = vld [vmem:[%s2299_s1 + $0x98] sm:$0xff]  ;;  %v311_v52 = vld [vmem:[%s2299_s1 + $0x90] sm:$0xff]  ;;  %v310_v56 = vld [vmem:[%s2299_s1 + $0x88] sm:$0xff] }
  0x24   : > { %1331 = vmatprep.subr.mxu1 %v349_v29  ;;  %1252 = vmatpush3.msra.mxu0 %v301_v30  ;;  %v344_v49 = vld [vmem:[%s2299_s1 + $0x198] sm:$0xff]  ;;  %v343_v53 = vld [vmem:[%s2299_s1 + $0x190] sm:$0xff]  ;;  %v342_v57 = vld [vmem:[%s2299_s1 + $0x188] sm:$0xff] }
  0x25   : > { %1332 = vmatpush3.msra.mxu1 %v333_v31  ;;  %1253 = vmatprep.subr.mxu0 %v316_v32  ;;  %v296_v50 = vld [vmem:[%s2299_s1 + $0x18] sm:$0xff]  ;;  %v295_v54 = vld [vmem:[%s2299_s1 + $0x10] sm:$0xff]  ;;  %v294_v58 = vld [vmem:[%s2299_s1 + $0x8] sm:$0xff] }
  0x26   : > { %1333 = vmatprep.subr.mxu1 %v348_v33  ;;  %1254 = vmatpush3.msra.mxu0 %v300_v34  ;;  %v328_v51 = vld [vmem:[%s2299_s1 + $0x118] sm:$0xff]  ;;  %v327_v55 = vld [vmem:[%s2299_s1 + $0x110] sm:$0xff]  ;;  %v326_v59 = vld [vmem:[%s2299_s1 + $0x108] sm:$0xff] }
  0x27   : > { %1334 = vmatpush3.msra.mxu1 %v332_v35  ;;  %1255 = vmatprep.subr.mxu0 %v315_v36  ;;  %v309_v60 = vld [vmem:[%s2299_s1 + $0x80] sm:$0xff]  ;;  %v230_v63 = vld [vmem:[%s1774_s23 + $0x8] sm:$0xff]  ;;  %v232_v1 = vld [vmem:[%s1774_s23 + $0x18] sm:$0xff] }
  0x28   : > { %1335 = vmatprep.subr.mxu1 %v347_v37  ;;  %1256 = vmatpush3.msra.mxu0 %v299_v38  ;;  %v341_v61 = vld [vmem:[%s2299_s1 + $0x180] sm:$0xff]  ;;  %v231_v3 = vld [vmem:[%s1774_s23 + $0x10] sm:$0xff]  ;;  %v234_v4 = vld [vmem:[%s1774_s23 + $0x28] sm:$0xff] }
  0x29   : > { %1336 = vmatpush3.msra.mxu1 %v331_v39  ;;  %1257 = vmatprep.subr.mxu0 %v314_v40  ;;  %v293_v62 = vld [vmem:[%s2299_s1] sm:$0xff]  ;;  %v236_v5 = vld [vmem:[%s1774_s23 + $0x38] sm:$0xff]  ;;  %v235_v7 = vld [vmem:[%s1774_s23 + $0x30] sm:$0xff] }
  0x2a   : > { %1337 = vmatprep.subr.mxu1 %v346_v41  ;;  %1258 = vmatpush3.msra.mxu0 %v298_v42  ;;  %v325_v0 = vld [vmem:[%s2299_s1 + $0x100] sm:$0xff]  ;;  %v238_v8 = vld [vmem:[%s1774_s23 + $0x48] sm:$0xff]  ;;  %v240_v9 = vld [vmem:[%s1774_s23 + $0x58] sm:$0xff] }
  0x2b   : > { %1338 = vmatpush3.msra.mxu1 %v330_v43  ;;  %1259 = vmatprep.subr.mxu0 %v313_v44  ;;  %v229_v2 = vld [vmem:[%s1774_s23] sm:$0xff]  ;;  %v239_v11 = vld [vmem:[%s1774_s23 + $0x50] sm:$0xff]  ;;  %v242_v12 = vld [vmem:[%s1774_s23 + $0x68] sm:$0xff] }
  0x2c   : > { %1339 = vmatprep.subr.mxu1 %v345_v45  ;;  %1260 = vmatpush3.msra.mxu0 %v297_v46  ;;  %v233_v6 = vld [vmem:[%s1774_s23 + $0x20] sm:$0xff]  ;;  %v244_v13 = vld [vmem:[%s1774_s23 + $0x78] sm:$0xff]  ;;  %v243_v15 = vld [vmem:[%s1774_s23 + $0x70] sm:$0xff] }
  0x2d   : > { %1340 = vmatpush3.msra.mxu1 %v329_v47  ;;  %1261 = vmatprep.subr.mxu0 %v312_v48  ;;  %v237_v10 = vld [vmem:[%s1774_s23 + $0x40] sm:$0xff]  ;;  %v731_v16 = vld [vmem:[%s2301_s3 + $0x1e8] sm:$0xff]  ;;  %v733_v17 = vld [vmem:[%s2301_s3 + $0x1f8] sm:$0xff] }
  0x2e   : > { %1341 = vmatprep.subr.mxu1 %v344_v49  ;;  %1262 = vmatpush3.msra.mxu0 %v296_v50  ;;  %v241_v14 = vld [vmem:[%s1774_s23 + $0x60] sm:$0xff]  ;;  %v732_v19 = vld [vmem:[%s2301_s3 + $0x1f0] sm:$0xff]  ;;  %v246_v20 = vld [vmem:[%s1774_s23 + $0x88] sm:$0xff] }
  0x2f   : > { %1342 = vmatpush3.msra.mxu1 %v328_v51  ;;  %1263 = vmatprep.subr.mxu0 %v311_v52  ;;  %v730_v18 = vld [vmem:[%s2301_s3 + $0x1e0] sm:$0xff]  ;;  %v248_v21 = vld [vmem:[%s1774_s23 + $0x98] sm:$0xff]  ;;  %v727_v22 = vld [vmem:[%s2301_s3 + $0x1c8] sm:$0xff] }
  0x30   : > { %1343 = vmatprep.subr.mxu1 %v343_v53  ;;  %1264 = vmatpush3.msra.mxu0 %v295_v54  ;;  %v729_v23 = vld [vmem:[%s2301_s3 + $0x1d8] sm:$0xff]  ;;  %v726_v24 = vld [vmem:[%s2301_s3 + $0x1c0] sm:$0xff]  ;;  %v728_v25 = vld [vmem:[%s2301_s3 + $0x1d0] sm:$0xff] }
  0x31   : > { %1344 = vmatpush3.msra.mxu1 %v327_v55  ;;  %1265 = vmatprep.subr.mxu0 %v310_v56  ;;  %v245_v26 = vld [vmem:[%s1774_s23 + $0x80] sm:$0xff]  ;;  %v247_v27 = vld [vmem:[%s1774_s23 + $0x90] sm:$0xff]  ;;  %v250_v28 = vld [vmem:[%s1774_s23 + $0xa8] sm:$0xff] }
  0x32   : > { %1345 = vmatprep.subr.mxu1 %v342_v57  ;;  %1266 = vmatpush3.msra.mxu0 %v294_v58  ;;  %v252_v29 = vld [vmem:[%s1774_s23 + $0xb8] sm:$0xff]  ;;  %v723_v30 = vld [vmem:[%s2301_s3 + $0x1a8] sm:$0xff]  ;;  %v722_v32 = vld [vmem:[%s2301_s3 + $0x1a0] sm:$0xff] }
  0x33   : > { %1346 = vmatpush3.msra.mxu1 %v326_v59  ;;  %1267 = vmatprep.subr.mxu0 %v309_v60  ;;  %v725_v31 = vld [vmem:[%s2301_s3 + $0x1b8] sm:$0xff]  ;;  %v724_v33 = vld [vmem:[%s2301_s3 + $0x1b0] sm:$0xff]  ;;  %v249_v34 = vld [vmem:[%s1774_s23 + $0xa0] sm:$0xff] }
  0x34   : > { %1347 = vmatprep.subr.mxu1 %v341_v61  ;;  %1268 = vmatpush3.msra.mxu0 %v293_v62  ;;  %v251_v35 = vld [vmem:[%s1774_s23 + $0xb0] sm:$0xff]  ;;  %v254_v36 = vld [vmem:[%s1774_s23 + $0xc8] sm:$0xff]  ;;  %v256_v37 = vld [vmem:[%s1774_s23 + $0xd8] sm:$0xff] }
  0x35   : > { %428 = vmatprep.mubr.f32.mxu0 %v230_v63  ;;  %1348 = vmatpush3.msra.mxu1 %v325_v0  ;;  %v719_v38 = vld [vmem:[%s2301_s3 + $0x188] sm:$0xff]  ;;  %v721_v39 = vld [vmem:[%s2301_s3 + $0x198] sm:$0xff]  ;;  %v718_v40 = vld [vmem:[%s2301_s3 + $0x180] sm:$0xff] }
  0x36   : > { %573 = vmatprep.mubr.f32.mxu1 %v232_v1  ;;  %429 = vmatmul.mubr.f32.vlgmr.msra.gmra.mxu0 %v229_v2  ;;  %v720_v41 = vld [vmem:[%s2301_s3 + $0x190] sm:$0xff]  ;;  %v253_v42 = vld [vmem:[%s1774_s23 + $0xc0] sm:$0xff]  ;;  %v258_v44 = vld [vmem:[%s1774_s23 + $0xe8] sm:$0xff] }
  0x37   : > { %574 = vmatmul.mubr.f32.vlgmr.msra.gmra.mxu1 %v231_v3  ;;  %433 = vmatprep.mubr.f32.mxu0 %v234_v4  ;;  %v255_v43 = vld [vmem:[%s1774_s23 + $0xd0] sm:$0xff]  ;;  %v260_v45 = vld [vmem:[%s1774_s23 + $0xf8] sm:$0xff]  ;;  %v715_v46 = vld [vmem:[%s2301_s3 + $0x168] sm:$0xff] }
  0x38   : > { %578 = vmatprep.mubr.f32.mxu1 %v236_v5  ;;  %756 = vmatprep.subr.mxu0 %v731_v16  ;;  %v717_v47 = vld [vmem:[%s2301_s3 + $0x178] sm:$0xff]  ;;  %v714_v48 = vld [vmem:[%s2301_s3 + $0x160] sm:$0xff]  ;;  %v716_v49 = vld [vmem:[%s2301_s3 + $0x170] sm:$0xff] }
  0x39   : > { %917 = vmatprep.subr.mxu1 %v733_v17  ;;  %757 = vmatpush1.msra.mxu0 %v730_v18  ;;  %v257_v50 = vld [vmem:[%s1774_s23 + $0xe0] sm:$0xff]  ;;  %v259_v51 = vld [vmem:[%s1774_s23 + $0xf0] sm:$0xff]  ;;  %v262_v52 = vld [vmem:[%s1774_s23 + $0x108] sm:$0xff] }
  0x3a   : > { %434 = vmatmul.mubr.f32.gmra.mxu0 %v233_v6  ;;  %918 = vmatpush1.msra.mxu1 %v732_v19  ;;  %v264_v53 = vld [vmem:[%s1774_s23 + $0x118] sm:$0xff]  ;;  %v711_v54 = vld [vmem:[%s2301_s3 + $0x148] sm:$0xff]  ;;  %v710_v56 = vld [vmem:[%s2301_s3 + $0x140] sm:$0xff] }
  0x3b   : > { %579 = vmatmul.mubr.f32.gmra.mxu1 %v235_v7  ;;  %438 = vmatprep.mubr.f32.mxu0 %v238_v8  ;;  %v713_v55 = vld [vmem:[%s2301_s3 + $0x158] sm:$0xff]  ;;  %v712_v57 = vld [vmem:[%s2301_s3 + $0x150] sm:$0xff]  ;;  %v261_v58 = vld [vmem:[%s1774_s23 + $0x100] sm:$0xff] }
  0x3c   : > { %583 = vmatprep.mubr.f32.mxu1 %v240_v9  ;;  %758 = vmatprep.subr.mxu0 %v727_v22  ;;  %v263_v59 = vld [vmem:[%s1774_s23 + $0x110] sm:$0xff]  ;;  %v266_v60 = vld [vmem:[%s1774_s23 + $0x128] sm:$0xff]  ;;  %v268_v61 = vld [vmem:[%s1774_s23 + $0x138] sm:$0xff] }
  0x3d   : > { %919 = vmatprep.subr.mxu1 %v729_v23  ;;  %759 = vmatpush1.msra.mxu0 %v726_v24  ;;  %v707_v62 = vld [vmem:[%s2301_s3 + $0x128] sm:$0xff]  ;;  %v709_v63 = vld [vmem:[%s2301_s3 + $0x138] sm:$0xff]  ;;  %v706_v0 = vld [vmem:[%s2301_s3 + $0x120] sm:$0xff] }
  0x3e   : > { %439 = vmatmul.mubr.f32.gmra.mxu0 %v237_v10  ;;  %920 = vmatpush1.msra.mxu1 %v728_v25  ;;  %v708_v1 = vld [vmem:[%s2301_s3 + $0x130] sm:$0xff]  ;;  %v265_v2 = vld [vmem:[%s1774_s23 + $0x120] sm:$0xff]  ;;  %v270_v4 = vld [vmem:[%s1774_s23 + $0x148] sm:$0xff] }
  0x3f   : > { %584 = vmatmul.mubr.f32.gmra.mxu1 %v239_v11  ;;  %443 = vmatprep.mubr.f32.mxu0 %v242_v12  ;;  %v267_v3 = vld [vmem:[%s1774_s23 + $0x130] sm:$0xff]  ;;  %v272_v5 = vld [vmem:[%s1774_s23 + $0x158] sm:$0xff]  ;;  %v703_v6 = vld [vmem:[%s2301_s3 + $0x108] sm:$0xff] }
  0x40   : > { %588 = vmatprep.mubr.f32.mxu1 %v244_v13  ;;  %760 = vmatprep.subr.mxu0 %v723_v30  ;;  %v705_v7 = vld [vmem:[%s2301_s3 + $0x118] sm:$0xff]  ;;  %v702_v8 = vld [vmem:[%s2301_s3 + $0x100] sm:$0xff]  ;;  %v704_v9 = vld [vmem:[%s2301_s3 + $0x110] sm:$0xff] }
  0x41   : > { %921 = vmatprep.subr.mxu1 %v725_v31  ;;  %761 = vmatpush1.msra.mxu0 %v722_v32  ;;  %v269_v10 = vld [vmem:[%s1774_s23 + $0x140] sm:$0xff]  ;;  %v271_v11 = vld [vmem:[%s1774_s23 + $0x150] sm:$0xff]  ;;  %v274_v12 = vld [vmem:[%s1774_s23 + $0x168] sm:$0xff] }
  0x42   : > { %444 = vmatmul.mubr.f32.gmra.mxu0 %v241_v14  ;;  %922 = vmatpush1.msra.mxu1 %v724_v33  ;;  %v276_v13 = vld [vmem:[%s1774_s23 + $0x178] sm:$0xff]  ;;  %v699_v14 = vld [vmem:[%s2301_s3 + $0xe8] sm:$0xff]  ;;  %v698_v16 = vld [vmem:[%s2301_s3 + $0xe0] sm:$0xff] }
  0x43   : > { %589 = vmatmul.mubr.f32.gmra.mxu1 %v243_v15  ;;  %448 = vmatprep.mubr.f32.mxu0 %v246_v20  ;;  %v701_v15 = vld [vmem:[%s2301_s3 + $0xf8] sm:$0xff]  ;;  %v700_v17 = vld [vmem:[%s2301_s3 + $0xf0] sm:$0xff]  ;;  %v273_v18 = vld [vmem:[%s1774_s23 + $0x160] sm:$0xff] }
  0x44   : > { %593 = vmatprep.mubr.f32.mxu1 %v248_v21  ;;  %762 = vmatprep.subr.mxu0 %v719_v38  ;;  %v275_v19 = vld [vmem:[%s1774_s23 + $0x170] sm:$0xff]  ;;  %v278_v20 = vld [vmem:[%s1774_s23 + $0x188] sm:$0xff]  ;;  %v280_v21 = vld [vmem:[%s1774_s23 + $0x198] sm:$0xff] }
  0x45   : > { %923 = vmatprep.subr.mxu1 %v721_v39  ;;  %763 = vmatpush1.msra.mxu0 %v718_v40  ;;  %v695_v22 = vld [vmem:[%s2301_s3 + $0xc8] sm:$0xff]  ;;  %v697_v23 = vld [vmem:[%s2301_s3 + $0xd8] sm:$0xff]  ;;  %v694_v24 = vld [vmem:[%s2301_s3 + $0xc0] sm:$0xff] }
  0x46   : > { %449 = vmatmul.mubr.f32.gmra.mxu0 %v245_v26  ;;  %924 = vmatpush1.msra.mxu1 %v720_v41  ;;  %v696_v25 = vld [vmem:[%s2301_s3 + $0xd0] sm:$0xff]  ;;  %v277_v26 = vld [vmem:[%s1774_s23 + $0x180] sm:$0xff]  ;;  %v691_v30 = vld [vmem:[%s2301_s3 + $0xa8] sm:$0xff] }
  0x47   : > { %594 = vmatmul.mubr.f32.gmra.mxu1 %v247_v27  ;;  %453 = vmatprep.mubr.f32.mxu0 %v250_v28  ;;  %v279_v27 = vld [vmem:[%s1774_s23 + $0x190] sm:$0xff]  ;;  %v282_v28 = vld [vmem:[%s1774_s23 + $0x1a8] sm:$0xff]  ;;  %v693_v31 = vld [vmem:[%s2301_s3 + $0xb8] sm:$0xff] }
  0x48   : > { %598 = vmatprep.mubr.f32.mxu1 %v252_v29  ;;  %764 = vmatprep.subr.mxu0 %v715_v46  ;;  %v284_v29 = vld [vmem:[%s1774_s23 + $0x1b8] sm:$0xff]  ;;  %v690_v32 = vld [vmem:[%s2301_s3 + $0xa0] sm:$0xff]  ;;  %v692_v33 = vld [vmem:[%s2301_s3 + $0xb0] sm:$0xff] }
  0x49   : > { %925 = vmatprep.subr.mxu1 %v717_v47  ;;  %765 = vmatpush1.msra.mxu0 %v714_v48  ;;  %v687_v38 = vld [vmem:[%s2301_s3 + $0x88] sm:$0xff]  ;;  %v689_v39 = vld [vmem:[%s2301_s3 + $0x98] sm:$0xff]  ;;  %v686_v40 = vld [vmem:[%s2301_s3 + $0x80] sm:$0xff] }
  0x4a   : > { %454 = vmatmul.mubr.f32.gmra.mxu0 %v249_v34  ;;  %926 = vmatpush1.msra.mxu1 %v716_v49  ;;  %v281_v34 = vld [vmem:[%s1774_s23 + $0x1a0] sm:$0xff]  ;;  %v688_v41 = vld [vmem:[%s2301_s3 + $0x90] sm:$0xff]  ;;  %v683_v46 = vld [vmem:[%s2301_s3 + $0x68] sm:$0xff] }
  0x4b   : > { %599 = vmatmul.mubr.f32.gmra.mxu1 %v251_v35  ;;  %458 = vmatprep.mubr.f32.mxu0 %v254_v36  ;;  %v283_v35 = vld [vmem:[%s1774_s23 + $0x1b0] sm:$0xff]  ;;  %v286_v36 = vld [vmem:[%s1774_s23 + $0x1c8] sm:$0xff]  ;;  %v685_v47 = vld [vmem:[%s2301_s3 + $0x78] sm:$0xff] }
  0x4c   : > { %603 = vmatprep.mubr.f32.mxu1 %v256_v37  ;;  %766 = vmatprep.subr.mxu0 %v711_v54  ;;  %v288_v37 = vld [vmem:[%s1774_s23 + $0x1d8] sm:$0xff]  ;;  %v682_v48 = vld [vmem:[%s2301_s3 + $0x60] sm:$0xff]  ;;  %v684_v49 = vld [vmem:[%s2301_s3 + $0x70] sm:$0xff] }
  0x4d   : > { %927 = vmatprep.subr.mxu1 %v713_v55  ;;  %767 = vmatpush1.msra.mxu0 %v710_v56  ;;  %v678_v54 = vld [vmem:[%s2301_s3 + $0x40] sm:$0xff]  ;;  %v680_v55 = vld [vmem:[%s2301_s3 + $0x50] sm:$0xff]  ;;  %v675_v56 = vld [vmem:[%s2301_s3 + $0x28] sm:$0xff] }
  0x4e   : > { %459 = vmatmul.mubr.f32.gmra.mxu0 %v253_v42  ;;  %928 = vmatpush1.msra.mxu1 %v712_v57  ;;  %v285_v42 = vld [vmem:[%s1774_s23 + $0x1c0] sm:$0xff]  ;;  %v677_v57 = vld [vmem:[%s2301_s3 + $0x38] sm:$0xff] }
  0x4f   : > { %604 = vmatmul.mubr.f32.gmra.mxu1 %v255_v43  ;;  %463 = vmatprep.mubr.f32.mxu0 %v258_v44  ;;  %v287_v43 = vld [vmem:[%s1774_s23 + $0x1d0] sm:$0xff]  ;;  %v290_v44 = vld [vmem:[%s1774_s23 + $0x1e8] sm:$0xff] }
  0x50   : > { %608 = vmatprep.mubr.f32.mxu1 %v260_v45  ;;  %768 = vmatprep.subr.mxu0 %v707_v62  ;;  %v292_v45 = vld [vmem:[%s1774_s23 + $0x1f8] sm:$0xff]  ;;  %v670_v62 = vld [vmem:[%s2301_s3] sm:$0xff] }
  0x51   : > { %929 = vmatprep.subr.mxu1 %v709_v63  ;;  %769 = vmatpush1.msra.mxu0 %v706_v0  ;;  %v672_v63 = vld [vmem:[%s2301_s3 + $0x10] sm:$0xff]  ;;  %v1501_v0 = vmov 0.0  }
  0x52   : > { %464 = vmatmul.mubr.f32.gmra.mxu0 %v257_v50  ;;  %930 = vmatpush1.msra.mxu1 %v708_v1  ;;  %v289_v50 = vld [vmem:[%s1774_s23 + $0x1e0] sm:$0xff] }
  0x53   : > { %609 = vmatmul.mubr.f32.gmra.mxu1 %v259_v51  ;;  %468 = vmatprep.mubr.f32.mxu0 %v262_v52  ;;  %v291_v51 = vld [vmem:[%s1774_s23 + $0x1f0] sm:$0xff]  ;;  %v679_v52 = vld [vmem:[%s2301_s3 + $0x48] sm:$0xff] }
  0x54   : > { %613 = vmatprep.mubr.f32.mxu1 %v264_v53  ;;  %770 = vmatprep.subr.mxu0 %v703_v6  ;;  %v681_v53 = vld [vmem:[%s2301_s3 + $0x58] sm:$0xff] }
  0x55   : > { %931 = vmatprep.subr.mxu1 %v705_v7  ;;  %771 = vmatpush1.msra.mxu0 %v702_v8 }
  0x56   : > { %469 = vmatmul.mubr.f32.gmra.mxu0 %v261_v58  ;;  %932 = vmatpush1.msra.mxu1 %v704_v9  ;;  %v674_v58 = vld [vmem:[%s2301_s3 + $0x20] sm:$0xff] }
  0x57   : > { %614 = vmatmul.mubr.f32.gmra.mxu1 %v263_v59  ;;  %473 = vmatprep.mubr.f32.mxu0 %v266_v60  ;;  %v676_v59 = vld [vmem:[%s2301_s3 + $0x30] sm:$0xff]  ;;  %v671_v60 = vld [vmem:[%s2301_s3 + $0x8] sm:$0xff] }
  0x58   : > { %618 = vmatprep.mubr.f32.mxu1 %v268_v61  ;;  %772 = vmatprep.subr.mxu0 %v699_v14  ;;  %v673_v61 = vld [vmem:[%s2301_s3 + $0x18] sm:$0xff] }
  0x59   : > { %933 = vmatprep.subr.mxu1 %v701_v15  ;;  %773 = vmatpush1.msra.mxu0 %v698_v16 }
  0x5a   : > { %474 = vmatmul.mubr.f32.gmra.mxu0 %v265_v2  ;;  %934 = vmatpush1.msra.mxu1 %v700_v17 }
  0x5b   : > { %619 = vmatmul.mubr.f32.gmra.mxu1 %v267_v3  ;;  %478 = vmatprep.mubr.f32.mxu0 %v270_v4  ;;  %v2055_v3 = vld [vmem:[%s2300_s2] ss:$0 sm:$0xff] }
  0x5c   : > { %623 = vmatprep.mubr.f32.mxu1 %v272_v5  ;;  %774 = vmatprep.subr.mxu0 %v695_v22 }
  0x5d   : > { %935 = vmatprep.subr.mxu1 %v697_v23  ;;  %775 = vmatpush1.msra.mxu0 %v694_v24 }
  0x5e   : > { %479 = vmatmul.mubr.f32.gmra.mxu0 %v269_v10  ;;  %936 = vmatpush1.msra.mxu1 %v696_v25 }
  0x5f   : > { %624 = vmatmul.mubr.f32.gmra.mxu1 %v271_v11  ;;  %483 = vmatprep.mubr.f32.mxu0 %v274_v12 }
  0x60   : > { %628 = vmatprep.mubr.f32.mxu1 %v276_v13  ;;  %776 = vmatprep.subr.mxu0 %v691_v30 }
  0x61   : > { %937 = vmatprep.subr.mxu1 %v693_v31  ;;  %777 = vmatpush1.msra.mxu0 %v690_v32 }
  0x62   : > { %484 = vmatmul.mubr.f32.gmra.mxu0 %v273_v18  ;;  %938 = vmatpush1.msra.mxu1 %v692_v33 }
  0x63   : > { %629 = vmatmul.mubr.f32.gmra.mxu1 %v275_v19  ;;  %488 = vmatprep.mubr.f32.mxu0 %v278_v20 }
  0x64   : > { %633 = vmatprep.mubr.f32.mxu1 %v280_v21  ;;  %778 = vmatprep.subr.mxu0 %v687_v38 }
  0x65   : > { %939 = vmatprep.subr.mxu1 %v689_v39  ;;  %779 = vmatpush1.msra.mxu0 %v686_v40 }
  0x66   : > { %489 = vmatmul.mubr.f32.gmra.mxu0 %v277_v26  ;;  %940 = vmatpush1.msra.mxu1 %v688_v41 }
  0x67   : > { %634 = vmatmul.mubr.f32.gmra.mxu1 %v279_v27  ;;  %493 = vmatprep.mubr.f32.mxu0 %v282_v28 }
  0x68   : > { %638 = vmatprep.mubr.f32.mxu1 %v284_v29  ;;  %780 = vmatprep.subr.mxu0 %v683_v46 }
  0x69   : > { %941 = vmatprep.subr.mxu1 %v685_v47  ;;  %781 = vmatpush1.msra.mxu0 %v682_v48 }
  0x6a   : > { %494 = vmatmul.mubr.f32.gmra.mxu0 %v281_v34  ;;  %942 = vmatpush1.msra.mxu1 %v684_v49 }
  0x6b   : > { %639 = vmatmul.mubr.f32.gmra.mxu1 %v283_v35  ;;  %498 = vmatprep.mubr.f32.mxu0 %v286_v36 }
  0x6c   : > { %643 = vmatprep.mubr.f32.mxu1 %v288_v37  ;;  %782 = vmatprep.subr.mxu0 %v679_v52 }
  0x6d   : > { %943 = vmatprep.subr.mxu1 %v681_v53  ;;  %783 = vmatpush1.msra.mxu0 %v678_v54 }
  0x6e   : > { %499 = vmatmul.mubr.f32.gmra.mxu0 %v285_v42  ;;  %944 = vmatpush1.msra.mxu1 %v680_v55 }
  0x6f   : > { %644 = vmatmul.mubr.f32.gmra.mxu1 %v287_v43  ;;  %503 = vmatprep.mubr.f32.mxu0 %v290_v44 }
  0x70   : > { %648 = vmatprep.mubr.f32.mxu1 %v292_v45  ;;  %784 = vmatprep.subr.mxu0 %v675_v56 }
  0x71   : > { %945 = vmatprep.subr.mxu1 %v677_v57  ;;  %785 = vmatpush1.msra.mxu0 %v674_v58 }
  0x72   : > { %504 = vmatmul.mubr.f32.gmra.mxu0 %v289_v50  ;;  %946 = vmatpush1.msra.mxu1 %v676_v59 }
  0x73   : > { %649 = vmatmul.mubr.f32.gmra.mxu1 %v291_v51  ;;  %786 = vmatprep.subr.mxu0 %v671_v60 }
  0x74   : > { %947 = vmatprep.subr.mxu1 %v673_v61  ;;  %787 = vmatpush1.msra.mxu0 %v670_v62 }
  0x75   : > { %948 = vmatpush1.msra.mxu1 %v672_v63  ;;  %820 = vmatprep.mubr.f32.mxu0 %v1501_v0 }
  0x76   : > { %981 = vmatprep.mubr.f32.mxu1 %v1501_v0 }
  0xf6   : > { %v1269_v1 = vpop.f32.mrf.mxu0 }
  0xf7   : > { %v1349_v2 = vpop.f32.mrf.mxu1 }
  0xf8   : > { %v1270_v4 = vpop.f32.mrf.mxu0 }
  0xf9   : > { %v1350_v5 = vpop.f32.mrf.mxu1  ;;  %v1271_v6 = vadd.f32 %v1270_v4, %v1269_v1 }
  0xfa   : > { %v1272_v7 = vpop.f32.mrf.mxu0  ;;  %v1351_v10 = vadd.f32 %v1350_v5, %v1349_v2 }
  0xfb   : > { %v1352_v8 = vpop.f32.mrf.mxu1  ;;  %v431_v9 = vadd.f32 %v1271_v6, %v2055_v3 }
  0xfc   : > { %v1273_v11 = vpop.f32.mrf.mxu0 }
  0xfd   : > { %v1353_v12 = vpop.f32.mrf.mxu1  ;;  %v576_v13 = vadd.f32 %v1351_v10, %v431_v9  ;;  %v1274_v14 = vadd.f32 %v1273_v11, %v1272_v7 }
  0xfe   : > { %v1275_v15 = vpop.f32.mrf.mxu0  ;;  %v1354_v19 = vadd.f32 %v1353_v12, %v1352_v8 }
  0xff   : > { %v1355_v16 = vpop.f32.mrf.mxu1  ;;  %v654_v17 = vmax.f32 %v576_v13, 0.0  ;;  %v436_v18 = vadd.f32 %v1274_v14, %v2055_v3 }
 0x100   : > { %v1276_v20 = vpop.f32.mrf.mxu0 }
 0x101   : > { %v1356_v21 = vpop.f32.mrf.mxu1  ;;  %v581_v22 = vadd.f32 %v1354_v19, %v436_v18  ;;  %v1277_v23 = vadd.f32 %v1276_v20, %v1275_v15  ;;  %821 = vmatmul.mubr.f32.vlgmr.msra.gmra.mxu0 %v654_v17  ;;  %982 = vmatmul.mubr.f32.vlgmr.msra.gmra.mxu1 %v654_v17 }
 0x102   : > { %v1278_v24 = vpop.f32.mrf.mxu0  ;;  %826 = vmatprep.mubr.f32.mxu0 %v1501_v0  ;;  %987 = vmatprep.mubr.f32.mxu1 %v1501_v0  ;;  %v1357_v28 = vadd.f32 %v1356_v21, %v1355_v16 }
 0x103   : > { %v1358_v25 = vpop.f32.mrf.mxu1  ;;  %v655_v26 = vmax.f32 %v581_v22, 0.0  ;;  %v441_v27 = vadd.f32 %v1277_v23, %v2055_v3 }
 0x104   : > { %v1279_v29 = vpop.f32.mrf.mxu0 }
 0x105   : > { %v1359_v30 = vpop.f32.mrf.mxu1  ;;  %v586_v31 = vadd.f32 %v1357_v28, %v441_v27  ;;  %v1280_v32 = vadd.f32 %v1279_v29, %v1278_v24  ;;  %827 = vmatmul.mubr.f32.gmra.mxu0 %v655_v26  ;;  %988 = vmatmul.mubr.f32.gmra.mxu1 %v655_v26 }
 0x106   : > { %v1281_v33 = vpop.f32.mrf.mxu0  ;;  %832 = vmatprep.mubr.f32.mxu0 %v1501_v0  ;;  %993 = vmatprep.mubr.f32.mxu1 %v1501_v0  ;;  %v1360_v37 = vadd.f32 %v1359_v30, %v1358_v25 }
 0x107   : > { %v1361_v34 = vpop.f32.mrf.mxu1  ;;  %v656_v35 = vmax.f32 %v586_v31, 0.0  ;;  %v446_v36 = vadd.f32 %v1280_v32, %v2055_v3 }
 0x108   : > { %v1282_v38 = vpop.f32.mrf.mxu0 }
 0x109   : > { %v1362_v39 = vpop.f32.mrf.mxu1  ;;  %v591_v40 = vadd.f32 %v1360_v37, %v446_v36  ;;  %v1283_v41 = vadd.f32 %v1282_v38, %v1281_v33  ;;  %833 = vmatmul.mubr.f32.gmra.mxu0 %v656_v35  ;;  %994 = vmatmul.mubr.f32.gmra.mxu1 %v656_v35 }
 0x10a   : > { %v1284_v42 = vpop.f32.mrf.mxu0  ;;  %838 = vmatprep.mubr.f32.mxu0 %v1501_v0  ;;  %999 = vmatprep.mubr.f32.mxu1 %v1501_v0  ;;  %v1363_v46 = vadd.f32 %v1362_v39, %v1361_v34 }
 0x10b   : > { %v1364_v43 = vpop.f32.mrf.mxu1  ;;  %v657_v44 = vmax.f32 %v591_v40, 0.0  ;;  %v451_v45 = vadd.f32 %v1283_v41, %v2055_v3 }
 0x10c   : > { %v1285_v47 = vpop.f32.mrf.mxu0 }
 0x10d   : > { %v1365_v48 = vpop.f32.mrf.mxu1  ;;  %v596_v49 = vadd.f32 %v1363_v46, %v451_v45  ;;  %v1286_v50 = vadd.f32 %v1285_v47, %v1284_v42  ;;  %839 = vmatmul.mubr.f32.gmra.mxu0 %v657_v44  ;;  %1000 = vmatmul.mubr.f32.gmra.mxu1 %v657_v44 }
 0x10e   : > { %v1287_v51 = vpop.f32.mrf.mxu0  ;;  %844 = vmatprep.mubr.f32.mxu0 %v1501_v0  ;;  %1005 = vmatprep.mubr.f32.mxu1 %v1501_v0  ;;  %v1366_v55 = vadd.f32 %v1365_v48, %v1364_v43 }
 0x10f   : > { %v1367_v52 = vpop.f32.mrf.mxu1  ;;  %v658_v53 = vmax.f32 %v596_v49, 0.0  ;;  %v456_v54 = vadd.f32 %v1286_v50, %v2055_v3 }
 0x110   : > { %v1288_v56 = vpop.f32.mrf.mxu0 }
 0x111   : > { %v1368_v57 = vpop.f32.mrf.mxu1  ;;  %v601_v58 = vadd.f32 %v1366_v55, %v456_v54  ;;  %v1289_v59 = vadd.f32 %v1288_v56, %v1287_v51  ;;  %845 = vmatmul.mubr.f32.gmra.mxu0 %v658_v53  ;;  %1006 = vmatmul.mubr.f32.gmra.mxu1 %v658_v53 }
 0x112   : > { %v1290_v60 = vpop.f32.mrf.mxu0  ;;  %850 = vmatprep.mubr.f32.mxu0 %v1501_v0  ;;  %1011 = vmatprep.mubr.f32.mxu1 %v1501_v0  ;;  %v1369_v1 = vadd.f32 %v1368_v57, %v1367_v52 }
 0x113   : > { %v1370_v61 = vpop.f32.mrf.mxu1  ;;  %v659_v62 = vmax.f32 %v601_v58, 0.0  ;;  %v461_v63 = vadd.f32 %v1289_v59, %v2055_v3 }
 0x114   : > { %v1291_v2 = vpop.f32.mrf.mxu0 }
 0x115   : > { %v1371_v4 = vpop.f32.mrf.mxu1  ;;  %v606_v5 = vadd.f32 %v1369_v1, %v461_v63  ;;  %v1292_v6 = vadd.f32 %v1291_v2, %v1290_v60  ;;  %851 = vmatmul.mubr.f32.gmra.mxu0 %v659_v62  ;;  %1012 = vmatmul.mubr.f32.gmra.mxu1 %v659_v62 }
 0x116   : > { %v1293_v7 = vpop.f32.mrf.mxu0  ;;  %856 = vmatprep.mubr.f32.mxu0 %v1501_v0  ;;  %1017 = vmatprep.mubr.f32.mxu1 %v1501_v0  ;;  %v1372_v11 = vadd.f32 %v1371_v4, %v1370_v61 }
 0x117   : > { %v1373_v8 = vpop.f32.mrf.mxu1  ;;  %v660_v9 = vmax.f32 %v606_v5, 0.0  ;;  %v466_v10 = vadd.f32 %v1292_v6, %v2055_v3 }
 0x118   : > { %v1294_v12 = vpop.f32.mrf.mxu0 }
 0x119   : > { %v1374_v13 = vpop.f32.mrf.mxu1  ;;  %v611_v14 = vadd.f32 %v1372_v11, %v466_v10  ;;  %v1295_v15 = vadd.f32 %v1294_v12, %v1293_v7  ;;  %857 = vmatmul.mubr.f32.gmra.mxu0 %v660_v9  ;;  %1018 = vmatmul.mubr.f32.gmra.mxu1 %v660_v9 }
 0x11a   : > { %v1296_v16 = vpop.f32.mrf.mxu0  ;;  %862 = vmatprep.mubr.f32.mxu0 %v1501_v0  ;;  %1023 = vmatprep.mubr.f32.mxu1 %v1501_v0  ;;  %v1375_v20 = vadd.f32 %v1374_v13, %v1373_v8 }
 0x11b   : > { %v1376_v17 = vpop.f32.mrf.mxu1  ;;  %v661_v18 = vmax.f32 %v611_v14, 0.0  ;;  %v471_v19 = vadd.f32 %v1295_v15, %v2055_v3 }
 0x11c   : > { %v1297_v21 = vpop.f32.mrf.mxu0 }
 0x11d   : > { %v1377_v22 = vpop.f32.mrf.mxu1  ;;  %v616_v23 = vadd.f32 %v1375_v20, %v471_v19  ;;  %v1298_v24 = vadd.f32 %v1297_v21, %v1296_v16  ;;  %863 = vmatmul.mubr.f32.gmra.mxu0 %v661_v18  ;;  %1024 = vmatmul.mubr.f32.gmra.mxu1 %v661_v18 }
 0x11e   : > { %v1299_v25 = vpop.f32.mrf.mxu0  ;;  %868 = vmatprep.mubr.f32.mxu0 %v1501_v0  ;;  %1029 = vmatprep.mubr.f32.mxu1 %v1501_v0  ;;  %v1378_v29 = vadd.f32 %v1377_v22, %v1376_v17  ;;  %v736_v22 = vlaneseq }
 0x11f   : > { %v1379_v26 = vpop.f32.mrf.mxu1  ;;  %v662_v27 = vmax.f32 %v616_v23, 0.0  ;;  %v476_v28 = vadd.f32 %v1298_v24, %v2055_v3 }
 0x120   : > { %v1300_v30 = vpop.f32.mrf.mxu0  ;;  %v737_v23 = vshrl.u32 %v736_v22, 7 }
 0x121   : > { %v1380_v31 = vpop.f32.mrf.mxu1  ;;  %v621_v32 = vadd.f32 %v1378_v29, %v476_v28  ;;  %v1301_v33 = vadd.f32 %v1300_v30, %v1299_v25  ;;  %869 = vmatmul.mubr.f32.gmra.mxu0 %v662_v27  ;;  %1030 = vmatmul.mubr.f32.gmra.mxu1 %v662_v27 }
 0x122   : > { %v1302_v34 = vpop.f32.mrf.mxu0  ;;  %874 = vmatprep.mubr.f32.mxu0 %v1501_v0  ;;  %1035 = vmatprep.mubr.f32.mxu1 %v1501_v0  ;;  %v1381_v38 = vadd.f32 %v1380_v31, %v1379_v26  ;;  %v738_v24 = vsub.s32 0, %v737_v23  ;;  %v746_v25 = vsub.s32 2, %v737_v23  ;;  %v742_v26 = vsub.s32 1, %v737_v23 }
 0x123   : > { %v1382_v35 = vpop.f32.mrf.mxu1  ;;  %v663_v36 = vmax.f32 %v621_v32, 0.0  ;;  %v481_v37 = vadd.f32 %v1301_v33, %v2055_v3  ;;  %v750_v27 = vsub.s32 3, %v737_v23 }
 0x124   : > { %v1303_v39 = vpop.f32.mrf.mxu0 }
 0x125   : > { %v1383_v40 = vpop.f32.mrf.mxu1  ;;  %v626_v41 = vadd.f32 %v1381_v38, %v481_v37  ;;  %v1304_v42 = vadd.f32 %v1303_v39, %v1302_v34  ;;  %875 = vmatmul.mubr.f32.gmra.mxu0 %v663_v36  ;;  %1036 = vmatmul.mubr.f32.gmra.mxu1 %v663_v36 }
 0x126   : > { %v1305_v43 = vpop.f32.mrf.mxu0  ;;  %880 = vmatprep.mubr.f32.mxu0 %v1501_v0  ;;  %1041 = vmatprep.mubr.f32.mxu1 %v1501_v0  ;;  %v1384_v47 = vadd.f32 %v1383_v40, %v1382_v35 }
 0x127   : > { %v1385_v44 = vpop.f32.mrf.mxu1  ;;  %v664_v45 = vmax.f32 %v626_v41, 0.0  ;;  %v486_v46 = vadd.f32 %v1304_v42, %v2055_v3 }
 0x128   : > { %v1306_v48 = vpop.f32.mrf.mxu0 }
 0x129   : > { %v1386_v49 = vpop.f32.mrf.mxu1  ;;  %v631_v50 = vadd.f32 %v1384_v47, %v486_v46  ;;  %v1307_v51 = vadd.f32 %v1306_v48, %v1305_v43  ;;  %881 = vmatmul.mubr.f32.gmra.mxu0 %v664_v45  ;;  %1042 = vmatmul.mubr.f32.gmra.mxu1 %v664_v45 }
 0x12a   : > { %v1308_v52 = vpop.f32.mrf.mxu0  ;;  %886 = vmatprep.mubr.f32.mxu0 %v1501_v0  ;;  %1047 = vmatprep.mubr.f32.mxu1 %v1501_v0  ;;  %v1387_v56 = vadd.f32 %v1386_v49, %v1385_v44 }
 0x12b   : > { %v1388_v53 = vpop.f32.mrf.mxu1  ;;  %v665_v54 = vmax.f32 %v631_v50, 0.0  ;;  %v491_v55 = vadd.f32 %v1307_v51, %v2055_v3 }
 0x12c   : > { %v1309_v57 = vpop.f32.mrf.mxu0 }
 0x12d   : > { %v1389_v58 = vpop.f32.mrf.mxu1  ;;  %v636_v59 = vadd.f32 %v1387_v56, %v491_v55  ;;  %v1310_v60 = vadd.f32 %v1309_v57, %v1308_v52  ;;  %887 = vmatmul.mubr.f32.gmra.mxu0 %v665_v54  ;;  %1048 = vmatmul.mubr.f32.gmra.mxu1 %v665_v54 }
 0x12e   : > { %v1311_v61 = vpop.f32.mrf.mxu0  ;;  %892 = vmatprep.mubr.f32.mxu0 %v1501_v0  ;;  %1053 = vmatprep.mubr.f32.mxu1 %v1501_v0  ;;  %v1390_v2 = vadd.f32 %v1389_v58, %v1388_v53 }
 0x12f   : > { %v1391_v62 = vpop.f32.mrf.mxu1  ;;  %v666_v63 = vmax.f32 %v636_v59, 0.0  ;;  %v496_v1 = vadd.f32 %v1310_v60, %v2055_v3 }
 0x130   : > { %v1312_v4 = vpop.f32.mrf.mxu0 }
 0x131   : > { %v1392_v5 = vpop.f32.mrf.mxu1  ;;  %v641_v6 = vadd.f32 %v1390_v2, %v496_v1  ;;  %v1313_v7 = vadd.f32 %v1312_v4, %v1311_v61  ;;  %893 = vmatmul.mubr.f32.gmra.mxu0 %v666_v63  ;;  %1054 = vmatmul.mubr.f32.gmra.mxu1 %v666_v63 }
 0x132   : > { %v1314_v8 = vpop.f32.mrf.mxu0  ;;  %898 = vmatprep.mubr.f32.mxu0 %v1501_v0  ;;  %1059 = vmatprep.mubr.f32.mxu1 %v1501_v0  ;;  %v1393_v12 = vadd.f32 %v1392_v5, %v1391_v62 }
 0x133   : > { %v1394_v9 = vpop.f32.mrf.mxu1  ;;  %v667_v10 = vmax.f32 %v641_v6, 0.0  ;;  %v501_v11 = vadd.f32 %v1313_v7, %v2055_v3 }
 0x134   : > { %v1315_v13 = vpop.f32.mrf.mxu0 }
 0x135   : > { %v1395_v14 = vpop.f32.mrf.mxu1  ;;  %v646_v15 = vadd.f32 %v1393_v12, %v501_v11  ;;  %v1316_v16 = vadd.f32 %v1315_v13, %v1314_v8  ;;  %899 = vmatmul.mubr.f32.gmra.mxu0 %v667_v10  ;;  %1060 = vmatmul.mubr.f32.gmra.mxu1 %v667_v10 }
 0x136   : > { %904 = vmatprep.mubr.f32.mxu0 %v1501_v0  ;;  %1065 = vmatprep.mubr.f32.mxu1 %v1501_v0  ;;  %v1396_v19 = vadd.f32 %v1395_v14, %v1394_v9 }
 0x137   : > { %v668_v17 = vmax.f32 %v646_v15, 0.0  ;;  %v506_v18 = vadd.f32 %v1316_v16, %v2055_v3  ;;  %v734_v3 = vld [vmem:[%s2302_s4] sm:$0xf] }
 0x138   : > { %v2109_v28 = vrot.slane %v734_v3, %v738_v24  ;;  %v2111_v29 = vrot.slane %v734_v3, %v746_v25  ;;  %v2115_v30 = vrot.slane %v734_v3, %v750_v27 }
 0x139   : > { %v651_v20 = vadd.f32 %v1396_v19, %v506_v18  ;;  %905 = vmatmul.mubr.f32.gmra.mxu0 %v668_v17  ;;  %1066 = vmatmul.mubr.f32.gmra.mxu1 %v668_v17 }
 0x13a   : > { %910 = vmatprep.mubr.f32.mxu0 %v1501_v0  ;;  %1071 = vmatprep.mubr.f32.mxu1 %v1501_v0  ;;  %v2113_v0 = vrot.slane %v734_v3, %v742_v26 }
 0x13b   : > { %v669_v21 = vmax.f32 %v651_v20, 0.0 }
 0x13d   : > { %911 = vmatmul.mubr.f32.gmra.mxu0 %v669_v21  ;;  %1072 = vmatmul.mubr.f32.gmra.mxu1 %v669_v21 }
 0x1c1   : > { %v822_v31 = vpop.f32.mrf.mxu0  ;;  %v983_v32 = vpop.f32.mrf.mxu1 }
 0x1c2   : > { %v823_v33 = vadd.f32 %v822_v31, %v2109_v28  ;;  %v984_v34 = vadd.f32 %v983_v32, %v2111_v29 }
 0x1c3   : > { %v824_v35 = vpop.f32.mrf.mxu0  ;;  %v985_v36 = vpop.f32.mrf.mxu1 }
 0x1c4   : > { %1078 = vst [vmem:[%s2119_s17] sm:$0xff] %v823_v33  ;;  %1080 = vst [vmem:[%s2119_s17 + $0x10] sm:$0xff] %v984_v34  ;;  %v825_v37 = vadd.f32 %v824_v35, %v2113_v0  ;;  %v986_v38 = vadd.f32 %v985_v36, %v2115_v30 }
 0x1c5   : > { %v828_v39 = vpop.f32.mrf.mxu0  ;;  %v989_v40 = vpop.f32.mrf.mxu1 }
 0x1c6   : > { %1079 = vst [vmem:[%s2119_s17 + $0x8] sm:$0xff] %v825_v37  ;;  %1081 = vst [vmem:[%s2119_s17 + $0x18] sm:$0xff] %v986_v38  ;;  %v829_v41 = vadd.f32 %v828_v39, %v2109_v28  ;;  %v990_v42 = vadd.f32 %v989_v40, %v2111_v29 }
 0x1c7   : > { %v830_v43 = vpop.f32.mrf.mxu0  ;;  %v991_v44 = vpop.f32.mrf.mxu1 }
 0x1c8   : > { %1082 = vst [vmem:[%s2119_s17 + $0x20] sm:$0xff] %v829_v41  ;;  %1084 = vst [vmem:[%s2119_s17 + $0x30] sm:$0xff] %v990_v42  ;;  %v831_v45 = vadd.f32 %v830_v43, %v2113_v0  ;;  %v992_v46 = vadd.f32 %v991_v44, %v2115_v30 }
 0x1c9   : > { %v834_v47 = vpop.f32.mrf.mxu0  ;;  %v995_v48 = vpop.f32.mrf.mxu1 }
 0x1ca   : > { %1083 = vst [vmem:[%s2119_s17 + $0x28] sm:$0xff] %v831_v45  ;;  %1085 = vst [vmem:[%s2119_s17 + $0x38] sm:$0xff] %v992_v46  ;;  %v835_v49 = vadd.f32 %v834_v47, %v2109_v28  ;;  %v996_v50 = vadd.f32 %v995_v48, %v2111_v29 }
 0x1cb   : > { %v836_v51 = vpop.f32.mrf.mxu0  ;;  %v997_v52 = vpop.f32.mrf.mxu1 }
 0x1cc   : > { %1086 = vst [vmem:[%s2119_s17 + $0x40] sm:$0xff] %v835_v49  ;;  %1088 = vst [vmem:[%s2119_s17 + $0x50] sm:$0xff] %v996_v50  ;;  %v837_v53 = vadd.f32 %v836_v51, %v2113_v0  ;;  %v998_v54 = vadd.f32 %v997_v52, %v2115_v30 }
 0x1cd   : > { %v840_v55 = vpop.f32.mrf.mxu0  ;;  %v1001_v56 = vpop.f32.mrf.mxu1 }
 0x1ce   : > { %1087 = vst [vmem:[%s2119_s17 + $0x48] sm:$0xff] %v837_v53  ;;  %1089 = vst [vmem:[%s2119_s17 + $0x58] sm:$0xff] %v998_v54  ;;  %v841_v57 = vadd.f32 %v840_v55, %v2109_v28  ;;  %v1002_v58 = vadd.f32 %v1001_v56, %v2111_v29 }
 0x1cf   : > { %v842_v59 = vpop.f32.mrf.mxu0  ;;  %v1003_v60 = vpop.f32.mrf.mxu1 }
 0x1d0   : > { %1090 = vst [vmem:[%s2119_s17 + $0x60] sm:$0xff] %v841_v57  ;;  %1092 = vst [vmem:[%s2119_s17 + $0x70] sm:$0xff] %v1002_v58  ;;  %v843_v61 = vadd.f32 %v842_v59, %v2113_v0  ;;  %v1004_v62 = vadd.f32 %v1003_v60, %v2115_v30 }
 0x1d1   : > { %v846_v63 = vpop.f32.mrf.mxu0  ;;  %v1007_v1 = vpop.f32.mrf.mxu1 }
 0x1d2   : > { %1091 = vst [vmem:[%s2119_s17 + $0x68] sm:$0xff] %v843_v61  ;;  %1093 = vst [vmem:[%s2119_s17 + $0x78] sm:$0xff] %v1004_v62  ;;  %v847_v2 = vadd.f32 %v846_v63, %v2109_v28  ;;  %v1008_v4 = vadd.f32 %v1007_v1, %v2111_v29 }
 0x1d3   : > { %v848_v5 = vpop.f32.mrf.mxu0  ;;  %v1009_v6 = vpop.f32.mrf.mxu1 }
 0x1d4   : > { %1094 = vst [vmem:[%s2119_s17 + $0x80] sm:$0xff] %v847_v2  ;;  %1096 = vst [vmem:[%s2119_s17 + $0x90] sm:$0xff] %v1008_v4  ;;  %v849_v7 = vadd.f32 %v848_v5, %v2113_v0  ;;  %v1010_v8 = vadd.f32 %v1009_v6, %v2115_v30 }
 0x1d5   : > { %v852_v9 = vpop.f32.mrf.mxu0  ;;  %v1013_v10 = vpop.f32.mrf.mxu1 }
 0x1d6   : > { %1095 = vst [vmem:[%s2119_s17 + $0x88] sm:$0xff] %v849_v7  ;;  %1097 = vst [vmem:[%s2119_s17 + $0x98] sm:$0xff] %v1010_v8  ;;  %v853_v11 = vadd.f32 %v852_v9, %v2109_v28  ;;  %v1014_v12 = vadd.f32 %v1013_v10, %v2111_v29 }
 0x1d7   : > { %v854_v13 = vpop.f32.mrf.mxu0  ;;  %v1015_v14 = vpop.f32.mrf.mxu1 }
 0x1d8   : > { %1098 = vst [vmem:[%s2119_s17 + $0xa0] sm:$0xff] %v853_v11  ;;  %1100 = vst [vmem:[%s2119_s17 + $0xb0] sm:$0xff] %v1014_v12  ;;  %v855_v15 = vadd.f32 %v854_v13, %v2113_v0  ;;  %v1016_v16 = vadd.f32 %v1015_v14, %v2115_v30 }
 0x1d9   : > { %v858_v17 = vpop.f32.mrf.mxu0  ;;  %v1019_v18 = vpop.f32.mrf.mxu1 }
 0x1da   : > { %1099 = vst [vmem:[%s2119_s17 + $0xa8] sm:$0xff] %v855_v15  ;;  %1101 = vst [vmem:[%s2119_s17 + $0xb8] sm:$0xff] %v1016_v16  ;;  %v859_v19 = vadd.f32 %v858_v17, %v2109_v28  ;;  %v1020_v20 = vadd.f32 %v1019_v18, %v2111_v29 }
 0x1db   : > { %v860_v21 = vpop.f32.mrf.mxu0  ;;  %v1021_v22 = vpop.f32.mrf.mxu1 }
 0x1dc   : > { %1102 = vst [vmem:[%s2119_s17 + $0xc0] sm:$0xff] %v859_v19  ;;  %1104 = vst [vmem:[%s2119_s17 + $0xd0] sm:$0xff] %v1020_v20  ;;  %v861_v23 = vadd.f32 %v860_v21, %v2113_v0  ;;  %v1022_v24 = vadd.f32 %v1021_v22, %v2115_v30 }
 0x1dd   : > { %v864_v25 = vpop.f32.mrf.mxu0  ;;  %v1025_v3 = vpop.f32.mrf.mxu1 }
 0x1de   : > { %1103 = vst [vmem:[%s2119_s17 + $0xc8] sm:$0xff] %v861_v23  ;;  %1105 = vst [vmem:[%s2119_s17 + $0xd8] sm:$0xff] %v1022_v24  ;;  %v865_v26 = vadd.f32 %v864_v25, %v2109_v28  ;;  %v1026_v27 = vadd.f32 %v1025_v3, %v2111_v29 }
 0x1df   : > { %v866_v31 = vpop.f32.mrf.mxu0  ;;  %v1027_v32 = vpop.f32.mrf.mxu1 }
 0x1e0   : > { %1106 = vst [vmem:[%s2119_s17 + $0xe0] sm:$0xff] %v865_v26  ;;  %1108 = vst [vmem:[%s2119_s17 + $0xf0] sm:$0xff] %v1026_v27  ;;  %v867_v33 = vadd.f32 %v866_v31, %v2113_v0  ;;  %v1028_v34 = vadd.f32 %v1027_v32, %v2115_v30 }
 0x1e1   : > { %v870_v35 = vpop.f32.mrf.mxu0  ;;  %v1031_v36 = vpop.f32.mrf.mxu1 }
 0x1e2   : > { %1107 = vst [vmem:[%s2119_s17 + $0xe8] sm:$0xff] %v867_v33  ;;  %1109 = vst [vmem:[%s2119_s17 + $0xf8] sm:$0xff] %v1028_v34  ;;  %v871_v37 = vadd.f32 %v870_v35, %v2109_v28  ;;  %v1032_v38 = vadd.f32 %v1031_v36, %v2111_v29 }
 0x1e3   : > { %v872_v39 = vpop.f32.mrf.mxu0  ;;  %v1033_v40 = vpop.f32.mrf.mxu1 }
 0x1e4   : > { %1110 = vst [vmem:[%s2119_s17 + $0x100] sm:$0xff] %v871_v37  ;;  %1112 = vst [vmem:[%s2119_s17 + $0x110] sm:$0xff] %v1032_v38  ;;  %v873_v41 = vadd.f32 %v872_v39, %v2113_v0  ;;  %v1034_v42 = vadd.f32 %v1033_v40, %v2115_v30 }
 0x1e5   : > { %v876_v43 = vpop.f32.mrf.mxu0  ;;  %v1037_v44 = vpop.f32.mrf.mxu1 }
 0x1e6   : > { %1111 = vst [vmem:[%s2119_s17 + $0x108] sm:$0xff] %v873_v41  ;;  %1113 = vst [vmem:[%s2119_s17 + $0x118] sm:$0xff] %v1034_v42  ;;  %v877_v45 = vadd.f32 %v876_v43, %v2109_v28  ;;  %v1038_v46 = vadd.f32 %v1037_v44, %v2111_v29 }
 0x1e7   : > { %v878_v47 = vpop.f32.mrf.mxu0  ;;  %v1039_v48 = vpop.f32.mrf.mxu1 }
 0x1e8   : > { %1114 = vst [vmem:[%s2119_s17 + $0x120] sm:$0xff] %v877_v45  ;;  %1116 = vst [vmem:[%s2119_s17 + $0x130] sm:$0xff] %v1038_v46  ;;  %v879_v49 = vadd.f32 %v878_v47, %v2113_v0  ;;  %v1040_v50 = vadd.f32 %v1039_v48, %v2115_v30 }
 0x1e9   : > { %v882_v51 = vpop.f32.mrf.mxu0  ;;  %v1043_v52 = vpop.f32.mrf.mxu1 }
 0x1ea   : > { %1115 = vst [vmem:[%s2119_s17 + $0x128] sm:$0xff] %v879_v49  ;;  %1117 = vst [vmem:[%s2119_s17 + $0x138] sm:$0xff] %v1040_v50  ;;  %v883_v53 = vadd.f32 %v882_v51, %v2109_v28  ;;  %v1044_v54 = vadd.f32 %v1043_v52, %v2111_v29 }
 0x1eb   : > { %v884_v55 = vpop.f32.mrf.mxu0  ;;  %v1045_v56 = vpop.f32.mrf.mxu1 }
 0x1ec   : > { %1118 = vst [vmem:[%s2119_s17 + $0x140] sm:$0xff] %v883_v53  ;;  %1120 = vst [vmem:[%s2119_s17 + $0x150] sm:$0xff] %v1044_v54  ;;  %v885_v57 = vadd.f32 %v884_v55, %v2113_v0  ;;  %v1046_v58 = vadd.f32 %v1045_v56, %v2115_v30 }
 0x1ed   : > { %v888_v59 = vpop.f32.mrf.mxu0  ;;  %v1049_v60 = vpop.f32.mrf.mxu1 }
 0x1ee   : > { %1119 = vst [vmem:[%s2119_s17 + $0x148] sm:$0xff] %v885_v57  ;;  %1121 = vst [vmem:[%s2119_s17 + $0x158] sm:$0xff] %v1046_v58  ;;  %v889_v61 = vadd.f32 %v888_v59, %v2109_v28  ;;  %v1050_v62 = vadd.f32 %v1049_v60, %v2111_v29 }
 0x1ef   : > { %v890_v63 = vpop.f32.mrf.mxu0  ;;  %v1051_v1 = vpop.f32.mrf.mxu1 }
 0x1f0   : > { %1122 = vst [vmem:[%s2119_s17 + $0x160] sm:$0xff] %v889_v61  ;;  %1124 = vst [vmem:[%s2119_s17 + $0x170] sm:$0xff] %v1050_v62  ;;  %v891_v2 = vadd.f32 %v890_v63, %v2113_v0  ;;  %v1052_v4 = vadd.f32 %v1051_v1, %v2115_v30 }
 0x1f1   : > { %v894_v5 = vpop.f32.mrf.mxu0  ;;  %v1055_v6 = vpop.f32.mrf.mxu1 }
 0x1f2   : > { %1123 = vst [vmem:[%s2119_s17 + $0x168] sm:$0xff] %v891_v2  ;;  %1125 = vst [vmem:[%s2119_s17 + $0x178] sm:$0xff] %v1052_v4  ;;  %v895_v7 = vadd.f32 %v894_v5, %v2109_v28  ;;  %v1056_v8 = vadd.f32 %v1055_v6, %v2111_v29 }
 0x1f3   : > { %v896_v9 = vpop.f32.mrf.mxu0  ;;  %v1057_v10 = vpop.f32.mrf.mxu1 }
 0x1f4   : > { %1126 = vst [vmem:[%s2119_s17 + $0x180] sm:$0xff] %v895_v7  ;;  %1128 = vst [vmem:[%s2119_s17 + $0x190] sm:$0xff] %v1056_v8  ;;  %v897_v11 = vadd.f32 %v896_v9, %v2113_v0  ;;  %v1058_v12 = vadd.f32 %v1057_v10, %v2115_v30 }
 0x1f5   : > { %v900_v13 = vpop.f32.mrf.mxu0  ;;  %v1061_v14 = vpop.f32.mrf.mxu1 }
 0x1f6   : > { %1127 = vst [vmem:[%s2119_s17 + $0x188] sm:$0xff] %v897_v11  ;;  %1129 = vst [vmem:[%s2119_s17 + $0x198] sm:$0xff] %v1058_v12  ;;  %v901_v15 = vadd.f32 %v900_v13, %v2109_v28  ;;  %v1062_v16 = vadd.f32 %v1061_v14, %v2111_v29 }
 0x1f7   : > { %v902_v17 = vpop.f32.mrf.mxu0  ;;  %v1063_v18 = vpop.f32.mrf.mxu1 }
 0x1f8   : > { %1130 = vst [vmem:[%s2119_s17 + $0x1a0] sm:$0xff] %v901_v15  ;;  %1132 = vst [vmem:[%s2119_s17 + $0x1b0] sm:$0xff] %v1062_v16  ;;  %v903_v19 = vadd.f32 %v902_v17, %v2113_v0  ;;  %v1064_v20 = vadd.f32 %v1063_v18, %v2115_v30 }
 0x1f9   : > { %v906_v21 = vpop.f32.mrf.mxu0  ;;  %v1067_v22 = vpop.f32.mrf.mxu1 }
 0x1fa   : > { %1131 = vst [vmem:[%s2119_s17 + $0x1a8] sm:$0xff] %v903_v19  ;;  %1133 = vst [vmem:[%s2119_s17 + $0x1b8] sm:$0xff] %v1064_v20  ;;  %v907_v23 = vadd.f32 %v906_v21, %v2109_v28  ;;  %v1068_v24 = vadd.f32 %v1067_v22, %v2111_v29 }
 0x1fb   : > { %v908_v25 = vpop.f32.mrf.mxu0  ;;  %v1069_v3 = vpop.f32.mrf.mxu1 }
 0x1fc   : > { %1134 = vst [vmem:[%s2119_s17 + $0x1c0] sm:$0xff] %v907_v23  ;;  %1136 = vst [vmem:[%s2119_s17 + $0x1d0] sm:$0xff] %v1068_v24  ;;  %v909_v26 = vadd.f32 %v908_v25, %v2113_v0  ;;  %v1070_v27 = vadd.f32 %v1069_v3, %v2115_v30 }
 0x1fd   : > { %v912_v31 = vpop.f32.mrf.mxu0  ;;  %v1073_v32 = vpop.f32.mrf.mxu1 }
 0x1fe   : > { %1135 = vst [vmem:[%s2119_s17 + $0x1c8] sm:$0xff] %v909_v26  ;;  %1137 = vst [vmem:[%s2119_s17 + $0x1d8] sm:$0xff] %v1070_v27  ;;  %v913_v33 = vadd.f32 %v912_v31, %v2109_v28  ;;  %v1074_v34 = vadd.f32 %v1073_v32, %v2111_v29 }
 0x1ff   : > { %v914_v35 = vpop.f32.mrf.mxu0  ;;  %v1075_v36 = vpop.f32.mrf.mxu1 }
 0x200   : > { %1138 = vst [vmem:[%s2119_s17 + $0x1e0] sm:$0xff] %v913_v33  ;;  %1140 = vst [vmem:[%s2119_s17 + $0x1f0] sm:$0xff] %v1074_v34  ;;  %v915_v37 = vadd.f32 %v914_v35, %v2113_v0  ;;  %v1076_v28 = vadd.f32 %v1075_v36, %v2115_v30 }
 0x202   : > { %1139 = vst [vmem:[%s2119_s17 + $0x1e8] sm:$0xff] %v915_v37  ;;  %1141 = vst [vmem:[%s2119_s17 + $0x1f8] sm:$0xff] %v1076_v28 }
 0x203   : > { %1452 = shalt.err (!%p1449_p3)
}
 0x204   : > { %s1453_s23 = scalar_lea.hbm %s2246_s16, 8192  ;;  %s1457_s25 = scalar_lea.hbm %s2303_s5, 32768 }
 0x205   : > { %p1454_p4 = scmp.ne.s32.totalorder %s2246_s16, %s1453_s23  ;;  %p1458_p9 = scmp.lt.s32.totalorder %s2246_s16, %s2303_s5 }
 0x206   : > { %p1459_p10 = scmp.lt.s32.totalorder %s1457_s25, %s1453_s23 }
 0x207   : > { %p1455_p7 = pnand %p1454_p4, %p1573_p5 }
 0x208   : > { %p1460_p11 = por %p1459_p10, %p1458_p9 }
 0x209   : > { %p1456_p8 = pneg %p1455_p7 }
 0x20b   : > { %p1461_p12 = pnand %p1460_p11, %p1456_p8 }
 0x20d   : > { %1464 = shalt.err (!%p1461_p12)
}
 0x20e   : > { %s1503_s17 = smov 512   ;;  %s1504_s11 = smov 32  }
 0x20f   : > { %1397 = dma.vmem_to_hbm [thread:$0]  (%p1573_p5), %s2248_s12, 8192, %s2246_s16, %s2258_s22, %s1503_s17, %s1503_s17, %s1504_s11  }
 0x210 PF: > { %p1403_p13 = scmp.ge.s32.totalorder %s1499_s21, 2  ;;  %s1172_s13 = sand.u32 1, %s1487_s18  }
 0x211   : > { %s1173_s15 = scalar_lea.sflag [#allocation3], %s1172_s13 }
 0x212   : > { %p1400_p0 = pnand %p1403_p13, %p1577_p6 }
 0x214   : > { %p1401_p1 = pneg %p1400_p0 }
 0x216   : > { %1482 = dma.done.wait (%p1401_p1), %s1173_s15, 8192  }
 0x217   : > { %1484 = vsyncadd (%p1401_p1), %s1173_s15, 4294959104  ;;  %p15_p2 = scmp.ge.s32.totalorder %s1560_s24, 6   ;;  %s2307_s18 = smov %s1491_s19 }
 0x218   : > { %s2308_s19 = smov %s1495_s20  ;;  %s2309_s20 = smov %s1571_s27 }
 0x219   : > { %s2310_s21 = smov %s1560_s24  ;;  %17 = sbr.rel (!%p15_p2) target bundleno = 3 (0x3), region = 75 }
 0x21e   :  { %1178 = vsyncpa [#allocation3], 1 }
 0x21f   :  { %1180 = vsyncpa [#allocation3 + $0x1], 1 }

</bundles_post_ra>
